<compile_context>
chip_gen: v5e
topology: v5e:2x2
jax: 0.10.0
libtpu: 0.0.40
codegen_flags: <defaults>
</compile_context>

<pallas_src>
import jax
import jax.numpy as jnp
from jax.experimental import pallas as pl
from jax.experimental.pallas import tpu as pltpu


def _single_parameters_kernel(params_ref, n_out_ref, q_out_ref):
    # params_ref: (2,) scalar-prefetch array in SMEM holding [n, q].
    # Pure write: fill each output tile with its broadcast scalar.
    n_out_ref[...] = jnp.full(n_out_ref.shape, params_ref[0], n_out_ref.dtype)
    q_out_ref[...] = jnp.full(q_out_ref.shape, params_ref[1], q_out_ref.dtype)


def _pick_block(dim, target, align):
    """Largest block <= target satisfying the TPU (8,128) tiling constraint.

    A block equal to the full array extent is always legal; otherwise the
    block must be a multiple of `align` (8 for sublanes, 128 for lanes).
    """
    if dim <= target:
        return dim
    return max((target // align) * align, align)


def single_parameters_forward(inputs, n_param, q_param,
                              *, bm_target=256, bn_target=2048):
    """Broadcast scalar params n, q over `inputs` shape via a Pallas kernel.

    inputs : (B, L) float32 (only shape/dtype are used; never read on-chip)
    n_param, q_param : scalar float32 learnable parameters
    returns (n_out, q_out), each (B, L) float32
    """
    B, L = inputs.shape
    dtype = inputs.dtype

    # Lane-dense, multi-MiB blocks; 2 outputs x 2 buffers x (bm*bn*4B) stays
    # well under the scoped-VMEM defaults on v5e/v6e/v7x.
    bm = _pick_block(B, bm_target, 8)
    bn = _pick_block(L, bn_target, 128)

    grid = (pl.cdiv(B, bm), pl.cdiv(L, bn))

    # Both scalars ride in one scalar-prefetch SMEM array.
    params = jnp.stack([jnp.asarray(n_param, dtype),
                        jnp.asarray(q_param, dtype)])

    out_spec = pl.BlockSpec((bm, bn), lambda i, j, params_ref: (i, j))

    n_out, q_out = pl.pallas_call(
        _single_parameters_kernel,
        out_shape=(
            jax.ShapeDtypeStruct((B, L), dtype),
            jax.ShapeDtypeStruct((B, L), dtype),
        ),
        grid_spec=pltpu.PrefetchScalarGridSpec(
            num_scalar_prefetch=1,
            grid=grid,
            in_specs=[],                      # no tensor inputs: pure write
            out_specs=(out_spec, out_spec),
        ),
        compiler_params=pltpu.CompilerParams(
            dimension_semantics=("parallel", "parallel"),
            vmem_limit_bytes=48 * 1024 * 1024,
        ),
    )(params)

    return n_out, q_out


if __name__ == "__main__":
    key = jax.random.PRNGKey(0)

    # Deterministic "config" values for the two scalar parameters
    # (cfg.variables.n, cfg.variables.q), e.g. Manning's n and lateral inflow q.
    n_param = jnp.float32(0.03)
    q_param = jnp.float32(0.5)

    # Small input consistent with the module: (batch=8, reaches=256)
    x = jax.random.normal(key, (8, 256), dtype=jnp.float32)

    n_out, q_out = single_parameters_forward(x, n_param, q_param)
    jax.block_until_ready((n_out, q_out))

    # Correctness check against the plain-JAX reference (broadcast semantics).
    assert n_out.shape == x.shape and q_out.shape == x.shape
    assert n_out.dtype == x.dtype and q_out.dtype == x.dtype
    assert jnp.allclose(n_out, jnp.full_like(x, n_param))
    assert jnp.allclose(q_out, jnp.full_like(x, q_param))

    print("KERNEL_OK")
</pallas_src>

<mosaic_0001>
module attributes {stable_mosaic.version = 11 : i64} {
  func.func @_single_parameters_kernel(%arg0: i32, %arg1: i32, %arg2: memref<2xf32, #tpu.memory_space<smem>>, %arg3: memref<8x256xf32, #tpu.memory_space<vmem>>, %arg4: memref<8x256xf32, #tpu.memory_space<vmem>>) attributes {dimension_semantics = [#tpu.dimension_semantics<parallel>, #tpu.dimension_semantics<parallel>], iteration_bounds = array<i64: 1, 1>, scalar_prefetch = 1 : i64, scratch_operands = 0 : i64, tpu.core_type = #tpu.core_type<tc>, window_params = [{transform_indices = @transform_0, window_bounds = array<i64: 8, 256>}, {transform_indices = @transform_1, window_bounds = array<i64: 8, 256>}]} {
    %c0 = arith.constant 0 : index
    %0 = memref.load %arg2[%c0] : memref<2xf32, #tpu.memory_space<smem>>
    %1 = vector.broadcast %0 : f32 to vector<8x256xf32>
    %c0_0 = arith.constant 0 : index
    %c0_1 = arith.constant 0 : index
    %2 = vector.load %arg3[%c0_0, %c0_1] : memref<8x256xf32, #tpu.memory_space<vmem>>, vector<8x256xf32>
    tpu.vector_store %arg3[%c0_0, %c0_1], %1 {strides = array<i32>} : memref<8x256xf32, #tpu.memory_space<vmem>>, vector<8x256xf32>,
    %c1 = arith.constant 1 : index
    %3 = memref.load %arg2[%c1] : memref<2xf32, #tpu.memory_space<smem>>
    %4 = vector.broadcast %3 : f32 to vector<8x256xf32>
    %c0_2 = arith.constant 0 : index
    %c0_3 = arith.constant 0 : index
    %5 = vector.load %arg4[%c0_2, %c0_3] : memref<8x256xf32, #tpu.memory_space<vmem>>, vector<8x256xf32>
    tpu.vector_store %arg4[%c0_2, %c0_3], %4 {strides = array<i32>} : memref<8x256xf32, #tpu.memory_space<vmem>>, vector<8x256xf32>,
    return
  }
  func.func @transform_0(%arg0: i32, %arg1: i32, %arg2: memref<2xf32, #tpu.memory_space<smem>>) -> (i32, i32) {
    %c0_i32 = arith.constant 0 : i32
    return %arg0, %arg1 : i32, i32
  }
  func.func @transform_1(%arg0: i32, %arg1: i32, %arg2: memref<2xf32, #tpu.memory_space<smem>>) -> (i32, i32) {
    %c0_i32 = arith.constant 0 : i32
    return %arg0, %arg1 : i32, i32
  }
}

</mosaic_0001>

<bundles_post_ra>
// kernel: tpu_custom_call.1
= control target key start
LH: loop header
LB: loop body
LE: loop exit
PB: predicated region body
PF: predicated region fallthrough
CT: control target
= control target key end

     0   :  { %s128_s12 = smov [#allocation3]   ;;  %s155_s0 = inlined_call_operand.hbm [shape: f32[2], index: 0, kind: input, shape index: {}]   ;;  %s156_s1 = inlined_call_operand.hbm [shape: f32[8,256], index: 1, kind: output, shape index: {0}]   ;;  %s157_s2 = inlined_call_operand.hbm [shape: f32[8,256], index: 2, kind: output, shape index: {1}]  }
   0x1   :  { %s9_s11 = sshll.u32 %s155_s0, 4  ;;  %s10_s11 = int_to_ptr.hbm [resolvable:$true] %s9_s11 }
   0x2   :  { %12 = dma.hbm_to_smem %s10_s11, 16, %s128_s12, [#allocation2] }
   0x3   :  { %122 = dma.done.wait [#allocation2], 16 }
   0x4   :  { %123 = vsyncadd [#allocation2], 4294967280 }
   0x5   :  { %15 = sfence }
   0x6   :  { %16 = vsyncpa [#allocation5], 0  ;;  %s18_s13 = sld [smem:[#allocation3]] }
   0x7   :  { %17 = vsyncpa [#allocation7], 0  ;;  %s58_s14 = sld [smem:[#allocation3 + $0x1]]  ;;  %s129_s15 = smov [#allocation4]  }
   0x8   :  { %s31_s16 = sshll.u32 %s129_s15, 4  ;;  %s33_s19 = sshll.u32 %s156_s1, 4  ;;  %s32_s16 = int_to_ptr.vmem [resolvable:$true] %s31_s16  ;;  %s34_s19 = int_to_ptr.hbm [resolvable:$true] %s33_s19 }
   0x9   :  { %s130_s20 = smov [#allocation6]   ;;  %s44_s23 = sshll.u32 %s157_s2, 4  ;;  %s45_s23 = int_to_ptr.hbm [resolvable:$true] %s44_s23 }
   0xa   :  { %s42_s21 = sshll.u32 %s130_s20, 4  ;;  %s43_s21 = int_to_ptr.vmem [resolvable:$true] %s42_s21 }
   0xc   :  { %v19_v0 = vstv %s18_s13 }
   0xd   :  { %20 = vst [vmem:[#allocation4] sm:$0xff] %v19_v0  ;;  %v23_v1 = vstv %s58_s14 }
   0xe   :  { %21 = vst [vmem:[#allocation4 + $0x8] sm:$0xff] %v19_v0 }
   0xf   :  { %24 = vst [vmem:[#allocation6] sm:$0xff] %v23_v1  ;;  %36 = dma.vmem_to_hbm [thread:$0]  %s32_s16, 256, %s34_s19, [#allocation5]  }
  0x10   :  { %25 = vst [vmem:[#allocation6 + $0x8] sm:$0xff] %v23_v1 }
  0x11   :  { %47 = dma.vmem_to_hbm [thread:$0]  %s43_s21, 256, %s45_s23, [#allocation7]  }
  0x12   :  { %124 = dma.done.wait [#allocation5], 256  }
  0x13   :  { %125 = vsyncadd [#allocation5], 4294967040 }
  0x14   :  { %126 = dma.done.wait [#allocation7], 256  }
  0x15   :  { %127 = vsyncadd [#allocation7], 4294967040 }
  0x16   :  { %56 = vsyncpa [#allocation5], 1 }
  0x17   :  { %57 = vsyncpa [#allocation7], 1 }

</bundles_post_ra>
